<compile_context>
chip_gen: v7x
topology: tpu7x:2x2x1
jax: 0.10.0
libtpu: 0.0.40
codegen_flags: <defaults>
</compile_context>

<pallas_src>
import functools

import jax
import jax.numpy as jnp
from jax.experimental import pallas as pl
from jax.experimental.pallas import tpu as pltpu

SCALES = (1, 2, 4, 8)          # PPCALayer groups=4 -> scale[:4], sum = 15
NUM_STYLE = sum(SCALES)        # 15


# ----------------------------- kernel ---------------------------------------

def _bottleneck_kernel(x_ref, w1_ref, b1_ref, w2_ref, b2_ref, w3_ref, b3_ref,
                       mask_ref, pool_ref, pw_ref, o_ref, col_ref, *, W):
    """One batch block per grid step.  All activations are (C, L)."""
    x = x_ref[0]                                      # (Cin, L) f32
    L = x.shape[-1]

    # ---- conv1 (1x1) + bn1 (scale folded into w1) + relu ------------------
    h1 = jnp.dot(w1_ref[...], x.astype(jnp.bfloat16),
                 preferred_element_type=jnp.float32)  # (P, L)
    h1 = jnp.maximum(h1 + b1_ref[...], 0.0)
    P = h1.shape[0]

    # ---- conv2 (3x3, stride=1, pad=1) + bn2 + relu ------------------------
    # Shift-and-mask im2col: for tap (dy, dx) the needed input at output lane
    # p is h1[:, p + dy*W + dx]; realize it as a lane roll, zero out invalid
    # (image-border / cross-image) lanes with a precomputed mask, and stack
    # the 9 taps into a (9*P, L) column buffer.  Then one bf16 MXU matmul.
    t = 0
    for dy in (-1, 0, 1):
        for dx in (-1, 0, 1):
            s = dy * W + dx
            shifted = h1 if s == 0 else pltpu.roll(h1, shift=(-s) % L, axis=1)
            col_ref[pl.ds(t * P, P), :] = shifted * mask_ref[pl.ds(t, 1), :]
            t += 1
    h2 = jnp.dot(w2_ref[...], col_ref[...].astype(jnp.bfloat16),
                 preferred_element_type=jnp.float32)  # (P, L)
    h2 = jnp.maximum(h2 + b2_ref[...], 0.0)

    # ---- conv3 (1x1) + bn3 (no relu yet) ----------------------------------
    h3 = jnp.dot(w3_ref[...], h2.astype(jnp.bfloat16),
                 preferred_element_type=jnp.float32)  # (C4, L)
    h3 = h3 + b3_ref[...]

    # ---- PPCA layer --------------------------------------------------------
    # ChannelPool over hierarchical channel groups as one small matmul.
    tf = jnp.dot(pool_ref[...], h3, preferred_element_type=jnp.float32)  # (15, L)
    # Points: normalize the 15 style features per spatial position.
    mu = jnp.mean(tf, axis=0, keepdims=True)
    var = jnp.mean((tf - mu) ** 2, axis=0, keepdims=True)      # unbiased=False
    tn = (tf - mu) * jax.lax.rsqrt(var + 1e-6)                  # eps guards var==0
    # Style integration: per-position weighted sum + sigmoid gate.
    z = jnp.sum(tn * pw_ref[...], axis=0, keepdims=True)        # (1, L)
    gate = pl.reciprocal(1.0 + jnp.exp(-z), approx=True)        # sigmoid on EUP

    # ---- gate, residual add, final relu ------------------------------------
    o_ref[0] = jnp.maximum(h3 * gate + x, 0.0)


# ----------------------------- host wrapper ---------------------------------

def _pick_batch_block(N, HW, max_lanes=2048):
    nb = 1
    for d in range(1, N + 1):
        if N % d == 0 and d * HW <= max(max_lanes, HW):
            nb = d
    return nb


def _conv_tap_masks(H, W, NB, L):
    """(9, L) 0/1 validity masks for the 9 conv taps over NB tiled images."""
    HW = H * W
    q = jnp.arange(HW)
    r, c = q // W, q % W
    rows = []
    for dy in (-1, 0, 1):
        for dx in (-1, 0, 1):
            valid = ((r + dy >= 0) & (r + dy < H) &
                     (c + dx >= 0) & (c + dx < W)).astype(jnp.float32)
            rows.append(jnp.tile(valid, NB))
    m = jnp.stack(rows, axis=0)                       # (9, NB*HW)
    return jnp.pad(m, ((0, 0), (0, L - NB * HW)))


def _tile_lanes(a, NB, L):
    """Tile a (K, HW) per-position array across NB images and pad to L lanes."""
    K, HW = a.shape
    t = jnp.tile(a, (1, NB))
    return jnp.pad(t, ((0, 0), (0, L - NB * HW)))


def _pool_matrix(C4):
    rows = []
    for i in SCALES:
        for j in range(i):
            lo, hi = C4 * j // i, C4 * (j + 1) // i
            rows.append(jnp.zeros((C4,), jnp.float32).at[lo:hi].set(1.0 / (hi - lo)))
    return jnp.stack(rows, axis=0)                    # (15, C4)


def bottleneck_forward(x_nchw, params, *, batch_block=None):
    N, Cin, H, W = x_nchw.shape
    HW = H * W
    P = params["w1b"].shape[0]
    C4 = params["w3b"].shape[0]
    assert Cin == C4, "stride=1 / downsample=None requires inplanes == planes*4"

    NB = batch_block or _pick_batch_block(N, HW)
    assert N % NB == 0
    NBLK = N // NB
    L = ((NB * HW + 127) // 128) * 128                # lane-pad to multiple of 128

    # (N, Cin, H, W) -> (NBLK, Cin, NB*HW) -> zero-pad lanes -> (NBLK, Cin, L)
    x_blk = x_nchw.reshape(NBLK, NB, Cin, HW).transpose(0, 2, 1, 3)
    x_blk = x_blk.reshape(NBLK, Cin, NB * HW)
    x_blk = jnp.pad(x_blk, ((0, 0), (0, 0), (0, L - NB * HW)))

    masks = _conv_tap_masks(H, W, NB, L)              # (9, L)
    pw = _tile_lanes(params["pw_15hw"], NB, L)        # (15, L)
    pool = params["pool"]                             # (15, C4)

    kernel = functools.partial(_bottleneck_kernel, W=W)

    def _full(a):
        nd = a.ndim
        return pl.BlockSpec(a.shape, lambda n, _nd=nd: (0,) * _nd)

    out = pl.pallas_call(
        kernel,
        out_shape=jax.ShapeDtypeStruct((NBLK, C4, L), jnp.float32),
        grid=(NBLK,),
        in_specs=[
            pl.BlockSpec((1, Cin, L), lambda n: (n, 0, 0)),        # x block
            _full(params["w1b"]), _full(params["b1"]),             # conv1/bn1
            _full(params["w2b"]), _full(params["b2"]),             # conv2/bn2
            _full(params["w3b"]), _full(params["b3"]),             # conv3/bn3
            _full(masks), _full(pool), _full(pw),                  # conv masks / PPCA
        ],
        out_specs=pl.BlockSpec((1, C4, L), lambda n: (n, 0, 0)),
        scratch_shapes=[pltpu.VMEM((9 * P, L), jnp.float32)],      # im2col buffer
        compiler_params=pltpu.CompilerParams(
            dimension_semantics=("parallel",)),
    )(x_blk, params["w1b"], params["b1"], params["w2b"], params["b2"],
      params["w3b"], params["b3"], masks, pool, pw)

    out = out[:, :, :NB * HW].reshape(NBLK, C4, NB, HW).transpose(0, 2, 1, 3)
    return out.reshape(N, C4, H, W)


# ------------------------- parameters & reference ---------------------------

def init_params(key, inplanes, planes, H, W):
    C4 = planes * 4
    HW = H * W
    ks = jax.random.split(key, 8)

    def bn(k, c):
        k1, k2, k3, k4 = jax.random.split(k, 4)
        gamma = 1.0 + 0.1 * jax.random.normal(k1, (c,), jnp.float32)
        beta = 0.1 * jax.random.normal(k2, (c,), jnp.float32)
        rmean = 0.1 * jax.random.normal(k3, (c,), jnp.float32)
        rvar = jax.random.uniform(k4, (c,), jnp.float32, 0.5, 1.5)
        scale = gamma / jnp.sqrt(rvar + 1e-5)
        shift = beta - rmean * scale
        return scale.reshape(c, 1), shift.reshape(c, 1)

    def bf16_grid(a):  # weights representable in bf16 (kernel feeds the MXU bf16)
        return a.astype(jnp.bfloat16).astype(jnp.float32)

    w1 = bf16_grid(0.3 * jax.random.normal(ks[0], (planes, inplanes), jnp.float32))
    s1, b1 = bn(ks[1], planes)
    w2_oihw = bf16_grid(0.3 * jax.random.normal(ks[2], (planes, planes, 3, 3),
                                                jnp.float32))
    s2, b2 = bn(ks[3], planes)
    w3 = bf16_grid(0.3 * jax.random.normal(ks[4], (C4, planes), jnp.float32))
    s3, b3 = bn(ks[5], C4)
    # PPCA weight: torch shape (num_fea=H*W, 15).  (__init__ zero-fills; use
    # small random values so the gate path is numerically exercised.)
    pw_hw15 = 0.1 * jax.random.normal(ks[6], (HW, NUM_STYLE), jnp.float32)

    # im2col weight layout: w2_flat[o, (ky*3+kx)*P + i] = w2[o, i, ky, kx]
    w2_flat = jnp.transpose(w2_oihw, (0, 2, 3, 1)).reshape(planes, 9 * planes)

    return {
        # reference-side (unfused, f32)
        "w1": w1, "s1": s1, "b1": b1,
        "w2_oihw": w2_oihw, "s2": s2, "b2": b2,
        "w3": w3, "s3": s3, "b3": b3,
        "pw_hw15": pw_hw15,
        # kernel-side (BN scale folded, bf16 MXU operands)
        "w1b": (s1 * w1).astype(jnp.bfloat16),
        "w2b": (s2 * w2_flat).astype(jnp.bfloat16),
        "w3b": (s3 * w3).astype(jnp.bfloat16),
        "pw_15hw": jnp.transpose(pw_hw15, (1, 0)),
        "pool": _pool_matrix(C4),
    }


def reference_forward(x, p):
    """Pure-JAX replica of Bottleneck.forward (eval-mode BN, downsample=None)."""
    N, Cin, H, W = x.shape
    HW = H * W
    hp = jax.lax.Precision.HIGHEST
    bch = lambda v: v.reshape(1, -1, 1, 1)
    h = jnp.einsum("oi,nihw->nohw", p["w1"], x, precision=hp)
    h = jnp.maximum(h * bch(p["s1"]) + bch(p["b1"]), 0.0)
    h = jax.lax.conv_general_dilated(h, p["w2_oihw"], (1, 1), ((1, 1), (1, 1)),
                                     dimension_numbers=("NCHW", "OIHW", "NCHW"),
                                     precision=hp)
    h = jnp.maximum(h * bch(p["s2"]) + bch(p["b2"]), 0.0)
    h = jnp.einsum("oi,nihw->nohw", p["w3"], h, precision=hp)
    h3 = h * bch(p["s3"]) + bch(p["b3"])
    C4 = h3.shape[1]
    feats = []
    for i in SCALES:
        for j in range(i):
            lo, hi = C4 * j // i, C4 * (j + 1) // i
            feats.append(jnp.mean(h3[:, lo:hi], axis=1).reshape(N, 1, HW))
    y_t = jnp.concatenate(feats, axis=1)                      # (N, 15, HW)
    mu = jnp.mean(y_t, axis=1, keepdims=True)
    std = jnp.sqrt(jnp.mean((y_t - mu) ** 2, axis=1, keepdims=True))
    y_t = (y_t - mu) / std
    z = jnp.sum(jnp.transpose(y_t, (0, 2, 1)) * p["pw_hw15"][None], axis=2)
    gate = jax.nn.sigmoid(z).reshape(N, 1, H, W)
    return jnp.maximum(h3 * gate + x, 0.0)


if __name__ == "__main__":
    # layer_idx=3 -> PPCA num_fea = 7*7, so spatial must be 7x7.
    N, planes, layer_idx = 2, 4, 3
    H = W = 7
    inplanes = planes * 4  # residual add with downsample=None requires this

    key = jax.random.PRNGKey(0)
    kp, kx = jax.random.split(key)
    params = init_params(kp, inplanes, planes, H, W)
    x = jax.random.normal(kx, (N, inplanes, H, W), jnp.float32)

    out = jax.block_until_ready(bottleneck_forward(x, params))
    ref = jax.block_until_ready(reference_forward(x, params))

    assert out.shape == (N, planes * 4, H, W)
    max_err = float(jnp.max(jnp.abs(out - ref)))
    if max_err < 5e-2:   # bf16 MXU operands vs f32-highest reference
        print("KERNEL_OK")
    else:
        print(f"MISMATCH max_abs_err={max_err}")
</pallas_src>

<mosaic_0001>
module attributes {stable_mosaic.version = 11 : i64} {
  func.func @_bottleneck_kernel(%arg0: i32, %arg1: memref<1x16x128xf32, #tpu.memory_space<vmem>>, %arg2: memref<4x16xbf16, #tpu.memory_space<vmem>>, %arg3: memref<4x1xf32, #tpu.memory_space<vmem>>, %arg4: memref<4x36xbf16, #tpu.memory_space<vmem>>, %arg5: memref<4x1xf32, #tpu.memory_space<vmem>>, %arg6: memref<16x4xbf16, #tpu.memory_space<vmem>>, %arg7: memref<16x1xf32, #tpu.memory_space<vmem>>, %arg8: memref<9x128xf32, #tpu.memory_space<vmem>>, %arg9: memref<15x16xf32, #tpu.memory_space<vmem>>, %arg10: memref<15x128xf32, #tpu.memory_space<vmem>>, %arg11: memref<1x16x128xf32, #tpu.memory_space<vmem>>, %arg12: memref<36x128xf32, #tpu.memory_space<vmem>>) attributes {dimension_semantics = [#tpu.dimension_semantics<parallel>], iteration_bounds = array<i64: 1>, scalar_prefetch = 0 : i64, scratch_operands = 1 : i64, tpu.core_type = #tpu.core_type<tc>, window_params = [{transform_indices = @transform_0, window_bounds = array<i64: 1, 16, 128>}, {pipeline_mode = #tpu.pipeline_mode<synchronous>, transform_indices = @transform_1, window_bounds = array<i64: 4, 16>}, {pipeline_mode = #tpu.pipeline_mode<synchronous>, transform_indices = @transform_2, window_bounds = array<i64: 4, 1>}, {pipeline_mode = #tpu.pipeline_mode<synchronous>, transform_indices = @transform_3, window_bounds = array<i64: 4, 36>}, {pipeline_mode = #tpu.pipeline_mode<synchronous>, transform_indices = @transform_4, window_bounds = array<i64: 4, 1>}, {pipeline_mode = #tpu.pipeline_mode<synchronous>, transform_indices = @transform_5, window_bounds = array<i64: 16, 4>}, {pipeline_mode = #tpu.pipeline_mode<synchronous>, transform_indices = @transform_6, window_bounds = array<i64: 16, 1>}, {pipeline_mode = #tpu.pipeline_mode<synchronous>, transform_indices = @transform_7, window_bounds = array<i64: 9, 128>}, {pipeline_mode = #tpu.pipeline_mode<synchronous>, transform_indices = @transform_8, window_bounds = array<i64: 15, 16>}, {pipeline_mode = #tpu.pipeline_mode<synchronous>, transform_indices = @transform_9, window_bounds = array<i64: 15, 128>}, {transform_indices = @transform_10, window_bounds = array<i64: 1, 16, 128>}]} {
    %c0 = arith.constant 0 : index
    %c0_0 = arith.constant 0 : index
    %c0_1 = arith.constant 0 : index
    %0 = vector.load %arg1[%c0, %c0_0, %c0_1] : memref<1x16x128xf32, #tpu.memory_space<vmem>>, vector<1x16x128xf32>
    %1 = vector.shape_cast %0 : vector<1x16x128xf32> to vector<16x128xf32>
    %c0_2 = arith.constant 0 : index
    %c0_3 = arith.constant 0 : index
    %2 = vector.load %arg2[%c0_2, %c0_3] : memref<4x16xbf16, #tpu.memory_space<vmem>>, vector<4x16xbf16>
    %3 = arith.truncf %1 : vector<16x128xf32> to vector<16x128xbf16>
    %cst = arith.constant dense<0.000000e+00> : vector<4x128xf32>
    %4 = tpu.matmul %2, %3, %cst {dimension_numbers = #tpu.dot_dimension_numbers<[1], [0], [0], [1], [0, 0, 1, 1], [], []>} : vector<4x16xbf16>, vector<16x128xbf16>, vector<4x128xf32> -> vector<4x128xf32>
    %c0_4 = arith.constant 0 : index
    %c0_5 = arith.constant 0 : index
    %5 = vector.load %arg3[%c0_4, %c0_5] : memref<4x1xf32, #tpu.memory_space<vmem>>, vector<4x1xf32>
    %6 = vector.broadcast %5 : vector<4x1xf32> to vector<4x128xf32>
    %7 = arith.addf %4, %6 : vector<4x128xf32>
    %cst_6 = arith.constant 0.000000e+00 : f32
    %8 = vector.broadcast %cst_6 : f32 to vector<4x128xf32>
    %9 = arith.maximumf %7, %8 : vector<4x128xf32>
    %c8_i32 = arith.constant 8 : i32
    %10 = tpu.dynamic_rotate %9 by %c8_i32 dim 1 : vector<4x128xf32>, i32 -> vector<4x128xf32>
    %c0_7 = arith.constant 0 : index
    %c0_8 = arith.constant 0 : index
    %11 = vector.load %arg8[%c0_7, %c0_8] : memref<9x128xf32, #tpu.memory_space<vmem>>, vector<1x128xf32>
    %12 = vector.broadcast %11 : vector<1x128xf32> to vector<4x128xf32>
    %13 = arith.mulf %10, %12 : vector<4x128xf32>
    %c0_9 = arith.constant 0 : index
    %c0_10 = arith.constant 0 : index
    %14 = vector.load %arg12[%c0_9, %c0_10] : memref<36x128xf32, #tpu.memory_space<vmem>>, vector<4x128xf32>
    tpu.vector_store %arg12[%c0_9, %c0_10], %13 {strides = array<i32>} : memref<36x128xf32, #tpu.memory_space<vmem>>, vector<4x128xf32>,
    %c7_i32 = arith.constant 7 : i32
    %15 = tpu.dynamic_rotate %9 by %c7_i32 dim 1 : vector<4x128xf32>, i32 -> vector<4x128xf32>
    %c1 = arith.constant 1 : index
    %c0_11 = arith.constant 0 : index
    %16 = vector.load %arg8[%c1, %c0_11] : memref<9x128xf32, #tpu.memory_space<vmem>>, vector<1x128xf32>
    %17 = vector.broadcast %16 : vector<1x128xf32> to vector<4x128xf32>
    %18 = arith.mulf %15, %17 : vector<4x128xf32>
    %c4 = arith.constant 4 : index
    %c0_12 = arith.constant 0 : index
    %19 = vector.load %arg12[%c4, %c0_12] : memref<36x128xf32, #tpu.memory_space<vmem>>, vector<4x128xf32>
    tpu.vector_store %arg12[%c4, %c0_12], %18 {strides = array<i32>} : memref<36x128xf32, #tpu.memory_space<vmem>>, vector<4x128xf32>,
    %c6_i32 = arith.constant 6 : i32
    %20 = tpu.dynamic_rotate %9 by %c6_i32 dim 1 : vector<4x128xf32>, i32 -> vector<4x128xf32>
    %c2 = arith.constant 2 : index
    %c0_13 = arith.constant 0 : index
    %21 = vector.load %arg8[%c2, %c0_13] : memref<9x128xf32, #tpu.memory_space<vmem>>, vector<1x128xf32>
    %22 = vector.broadcast %21 : vector<1x128xf32> to vector<4x128xf32>
    %23 = arith.mulf %20, %22 : vector<4x128xf32>
    %c8 = arith.constant 8 : index
    %c0_14 = arith.constant 0 : index
    %24 = vector.load %arg12[%c8, %c0_14] : memref<36x128xf32, #tpu.memory_space<vmem>>, vector<4x128xf32>
    tpu.vector_store %arg12[%c8, %c0_14], %23 {strides = array<i32>} : memref<36x128xf32, #tpu.memory_space<vmem>>, vector<4x128xf32>,
    %c1_i32 = arith.constant 1 : i32
    %25 = tpu.dynamic_rotate %9 by %c1_i32 dim 1 : vector<4x128xf32>, i32 -> vector<4x128xf32>
    %c3 = arith.constant 3 : index
    %c0_15 = arith.constant 0 : index
    %26 = vector.load %arg8[%c3, %c0_15] : memref<9x128xf32, #tpu.memory_space<vmem>>, vector<1x128xf32>
    %27 = vector.broadcast %26 : vector<1x128xf32> to vector<4x128xf32>
    %28 = arith.mulf %25, %27 : vector<4x128xf32>
    %c12 = arith.constant 12 : index
    %c0_16 = arith.constant 0 : index
    %29 = vector.load %arg12[%c12, %c0_16] : memref<36x128xf32, #tpu.memory_space<vmem>>, vector<4x128xf32>
    tpu.vector_store %arg12[%c12, %c0_16], %28 {strides = array<i32>} : memref<36x128xf32, #tpu.memory_space<vmem>>, vector<4x128xf32>,
    %c4_17 = arith.constant 4 : index
    %c0_18 = arith.constant 0 : index
    %30 = vector.load %arg8[%c4_17, %c0_18] : memref<9x128xf32, #tpu.memory_space<vmem>>, vector<1x128xf32>
    %31 = vector.broadcast %30 : vector<1x128xf32> to vector<4x128xf32>
    %32 = arith.mulf %9, %31 : vector<4x128xf32>
    %c16 = arith.constant 16 : index
    %c0_19 = arith.constant 0 : index
    %33 = vector.load %arg12[%c16, %c0_19] : memref<36x128xf32, #tpu.memory_space<vmem>>, vector<4x128xf32>
    tpu.vector_store %arg12[%c16, %c0_19], %32 {strides = array<i32>} : memref<36x128xf32, #tpu.memory_space<vmem>>, vector<4x128xf32>,
    %c127_i32 = arith.constant 127 : i32
    %34 = tpu.dynamic_rotate %9 by %c127_i32 dim 1 : vector<4x128xf32>, i32 -> vector<4x128xf32>
    %c5 = arith.constant 5 : index
    %c0_20 = arith.constant 0 : index
    %35 = vector.load %arg8[%c5, %c0_20] : memref<9x128xf32, #tpu.memory_space<vmem>>, vector<1x128xf32>
    %36 = vector.broadcast %35 : vector<1x128xf32> to vector<4x128xf32>
    %37 = arith.mulf %34, %36 : vector<4x128xf32>
    %c20 = arith.constant 20 : index
    %c0_21 = arith.constant 0 : index
    %38 = vector.load %arg12[%c20, %c0_21] : memref<36x128xf32, #tpu.memory_space<vmem>>, vector<4x128xf32>
    tpu.vector_store %arg12[%c20, %c0_21], %37 {strides = array<i32>} : memref<36x128xf32, #tpu.memory_space<vmem>>, vector<4x128xf32>,
    %c122_i32 = arith.constant 122 : i32
    %39 = tpu.dynamic_rotate %9 by %c122_i32 dim 1 : vector<4x128xf32>, i32 -> vector<4x128xf32>
    %c6 = arith.constant 6 : index
    %c0_22 = arith.constant 0 : index
    %40 = vector.load %arg8[%c6, %c0_22] : memref<9x128xf32, #tpu.memory_space<vmem>>, vector<1x128xf32>
    %41 = vector.broadcast %40 : vector<1x128xf32> to vector<4x128xf32>
    %42 = arith.mulf %39, %41 : vector<4x128xf32>
    %c24 = arith.constant 24 : index
    %c0_23 = arith.constant 0 : index
    %43 = vector.load %arg12[%c24, %c0_23] : memref<36x128xf32, #tpu.memory_space<vmem>>, vector<4x128xf32>
    tpu.vector_store %arg12[%c24, %c0_23], %42 {strides = array<i32>} : memref<36x128xf32, #tpu.memory_space<vmem>>, vector<4x128xf32>,
    %c121_i32 = arith.constant 121 : i32
    %44 = tpu.dynamic_rotate %9 by %c121_i32 dim 1 : vector<4x128xf32>, i32 -> vector<4x128xf32>
    %c7 = arith.constant 7 : index
    %c0_24 = arith.constant 0 : index
    %45 = vector.load %arg8[%c7, %c0_24] : memref<9x128xf32, #tpu.memory_space<vmem>>, vector<1x128xf32>
    %46 = vector.broadcast %45 : vector<1x128xf32> to vector<4x128xf32>
    %47 = arith.mulf %44, %46 : vector<4x128xf32>
    %c28 = arith.constant 28 : index
    %c0_25 = arith.constant 0 : index
    %48 = vector.load %arg12[%c28, %c0_25] : memref<36x128xf32, #tpu.memory_space<vmem>>, vector<4x128xf32>
    tpu.vector_store %arg12[%c28, %c0_25], %47 {strides = array<i32>} : memref<36x128xf32, #tpu.memory_space<vmem>>, vector<4x128xf32>,
    %c120_i32 = arith.constant 120 : i32
    %49 = tpu.dynamic_rotate %9 by %c120_i32 dim 1 : vector<4x128xf32>, i32 -> vector<4x128xf32>
    %c8_26 = arith.constant 8 : index
    %c0_27 = arith.constant 0 : index
    %50 = vector.load %arg8[%c8_26, %c0_27] : memref<9x128xf32, #tpu.memory_space<vmem>>, vector<1x128xf32>
    %51 = vector.broadcast %50 : vector<1x128xf32> to vector<4x128xf32>
    %52 = arith.mulf %49, %51 : vector<4x128xf32>
    %c32 = arith.constant 32 : index
    %c0_28 = arith.constant 0 : index
    %53 = vector.load %arg12[%c32, %c0_28] : memref<36x128xf32, #tpu.memory_space<vmem>>, vector<4x128xf32>
    tpu.vector_store %arg12[%c32, %c0_28], %52 {strides = array<i32>} : memref<36x128xf32, #tpu.memory_space<vmem>>, vector<4x128xf32>,
    %c0_29 = arith.constant 0 : index
    %c0_30 = arith.constant 0 : index
    %54 = vector.load %arg4[%c0_29, %c0_30] : memref<4x36xbf16, #tpu.memory_space<vmem>>, vector<4x36xbf16>
    %c0_31 = arith.constant 0 : index
    %c0_32 = arith.constant 0 : index
    %55 = vector.load %arg12[%c0_31, %c0_32] : memref<36x128xf32, #tpu.memory_space<vmem>>, vector<36x128xf32>
    %56 = arith.truncf %55 : vector<36x128xf32> to vector<36x128xbf16>
    %cst_33 = arith.constant dense<0.000000e+00> : vector<4x128xf32>
    %57 = tpu.matmul %54, %56, %cst_33 {dimension_numbers = #tpu.dot_dimension_numbers<[1], [0], [0], [1], [0, 0, 1, 1], [], []>} : vector<4x36xbf16>, vector<36x128xbf16>, vector<4x128xf32> -> vector<4x128xf32>
    %c0_34 = arith.constant 0 : index
    %c0_35 = arith.constant 0 : index
    %58 = vector.load %arg5[%c0_34, %c0_35] : memref<4x1xf32, #tpu.memory_space<vmem>>, vector<4x1xf32>
    %59 = vector.broadcast %58 : vector<4x1xf32> to vector<4x128xf32>
    %60 = arith.addf %57, %59 : vector<4x128xf32>
    %cst_36 = arith.constant 0.000000e+00 : f32
    %61 = vector.broadcast %cst_36 : f32 to vector<4x128xf32>
    %62 = arith.maximumf %60, %61 : vector<4x128xf32>
    %c0_37 = arith.constant 0 : index
    %c0_38 = arith.constant 0 : index
    %63 = vector.load %arg6[%c0_37, %c0_38] : memref<16x4xbf16, #tpu.memory_space<vmem>>, vector<16x4xbf16>
    %64 = arith.truncf %62 : vector<4x128xf32> to vector<4x128xbf16>
    %cst_39 = arith.constant dense<0.000000e+00> : vector<16x128xf32>
    %65 = tpu.matmul %63, %64, %cst_39 {dimension_numbers = #tpu.dot_dimension_numbers<[1], [0], [0], [1], [0, 0, 1, 1], [], []>} : vector<16x4xbf16>, vector<4x128xbf16>, vector<16x128xf32> -> vector<16x128xf32>
    %c0_40 = arith.constant 0 : index
    %c0_41 = arith.constant 0 : index
    %66 = vector.load %arg7[%c0_40, %c0_41] : memref<16x1xf32, #tpu.memory_space<vmem>>, vector<16x1xf32>
    %67 = vector.broadcast %66 : vector<16x1xf32> to vector<16x128xf32>
    %68 = arith.addf %65, %67 : vector<16x128xf32>
    %c0_42 = arith.constant 0 : index
    %c0_43 = arith.constant 0 : index
    %69 = vector.load %arg9[%c0_42, %c0_43] : memref<15x16xf32, #tpu.memory_space<vmem>>, vector<15x16xf32>
    %cst_44 = arith.constant dense<0.000000e+00> : vector<15x128xf32>
    %70 = tpu.matmul %69, %68, %cst_44 {dimension_numbers = #tpu.dot_dimension_numbers<[1], [0], [0], [1], [0, 0, 1, 1], [], []>} : vector<15x16xf32>, vector<16x128xf32>, vector<15x128xf32> -> vector<15x128xf32>
    %cst_45 = arith.constant dense<0.000000e+00> : vector<128xf32>
    %71 = vector.multi_reduction <add>, %70, %cst_45 [0] : vector<15x128xf32> to vector<128xf32>
    %72 = vector.shape_cast %71 : vector<128xf32> to vector<1x128xf32>
    %cst_46 = arith.constant 1.500000e+01 : f32
    %73 = vector.broadcast %cst_46 : f32 to vector<1x128xf32>
    %74 = arith.divf %72, %73 : vector<1x128xf32>
    %75 = vector.broadcast %74 : vector<1x128xf32> to vector<15x128xf32>
    %76 = arith.subf %70, %75 : vector<15x128xf32>
    %77 = arith.mulf %76, %76 : vector<15x128xf32>
    %cst_47 = arith.constant dense<0.000000e+00> : vector<128xf32>
    %78 = vector.multi_reduction <add>, %77, %cst_47 [0] : vector<15x128xf32> to vector<128xf32>
    %79 = vector.shape_cast %78 : vector<128xf32> to vector<1x128xf32>
    %cst_48 = arith.constant 1.500000e+01 : f32
    %80 = vector.broadcast %cst_48 : f32 to vector<1x128xf32>
    %81 = arith.divf %79, %80 : vector<1x128xf32>
    %82 = vector.broadcast %74 : vector<1x128xf32> to vector<15x128xf32>
    %83 = arith.subf %70, %82 : vector<15x128xf32>
    %cst_49 = arith.constant 9.99999997E-7 : f32
    %84 = vector.broadcast %cst_49 : f32 to vector<1x128xf32>
    %85 = arith.addf %81, %84 : vector<1x128xf32>
    %86 = math.rsqrt %85 : vector<1x128xf32>
    %87 = vector.broadcast %86 : vector<1x128xf32> to vector<15x128xf32>
    %88 = arith.mulf %83, %87 : vector<15x128xf32>
    %c0_50 = arith.constant 0 : index
    %c0_51 = arith.constant 0 : index
    %89 = vector.load %arg10[%c0_50, %c0_51] : memref<15x128xf32, #tpu.memory_space<vmem>>, vector<15x128xf32>
    %90 = arith.mulf %88, %89 : vector<15x128xf32>
    %cst_52 = arith.constant dense<0.000000e+00> : vector<128xf32>
    %91 = vector.multi_reduction <add>, %90, %cst_52 [0] : vector<15x128xf32> to vector<128xf32>
    %92 = vector.shape_cast %91 : vector<128xf32> to vector<1x128xf32>
    %cst_53 = arith.constant 0.000000e+00 : f32
    %93 = vector.broadcast %cst_53 : f32 to vector<1x128xf32>
    %94 = arith.subf %93, %92 : vector<1x128xf32>
    %95 = math.exp %94 : vector<1x128xf32>
    %cst_54 = arith.constant 1.000000e+00 : f32
    %96 = vector.broadcast %cst_54 : f32 to vector<1x128xf32>
    %97 = arith.addf %96, %95 : vector<1x128xf32>
    %98 = tpu.reciprocal %97 {approx = true} : vector<1x128xf32> -> vector<1x128xf32>
    %99 = vector.broadcast %98 : vector<1x128xf32> to vector<16x128xf32>
    %100 = arith.mulf %68, %99 : vector<16x128xf32>
    %101 = arith.addf %100, %1 : vector<16x128xf32>
    %cst_55 = arith.constant 0.000000e+00 : f32
    %102 = vector.broadcast %cst_55 : f32 to vector<16x128xf32>
    %103 = arith.maximumf %101, %102 : vector<16x128xf32>
    %c0_56 = arith.constant 0 : index
    %c0_57 = arith.constant 0 : index
    %c0_58 = arith.constant 0 : index
    %104 = vector.load %arg11[%c0_56, %c0_57, %c0_58] : memref<1x16x128xf32, #tpu.memory_space<vmem>>, vector<1x16x128xf32>
    %105 = vector.shape_cast %104 : vector<1x16x128xf32> to vector<16x128xf32>
    %106 = vector.shape_cast %103 : vector<16x128xf32> to vector<1x16x128xf32>
    tpu.vector_store %arg11[%c0_56, %c0_57, %c0_58], %106 {strides = array<i32>} : memref<1x16x128xf32, #tpu.memory_space<vmem>>, vector<1x16x128xf32>,
    return
  }
  func.func @transform_0(%arg0: i32) -> (i32, i32, i32) {
    %c0_i32 = arith.constant 0 : i32
    %c0_i32_0 = arith.constant 0 : i32
    %c0_i32_1 = arith.constant 0 : i32
    return %arg0, %c0_i32, %c0_i32_0 : i32, i32, i32
  }
  func.func @transform_1(%arg0: i32) -> (i32, i32) {
    %c0_i32 = arith.constant 0 : i32
    %c0_i32_0 = arith.constant 0 : i32
    %c0_i32_1 = arith.constant 0 : i32
    return %c0_i32, %c0_i32_0 : i32, i32
  }
  func.func @transform_2(%arg0: i32) -> (i32, i32) {
    %c0_i32 = arith.constant 0 : i32
    %c0_i32_0 = arith.constant 0 : i32
    %c0_i32_1 = arith.constant 0 : i32
    return %c0_i32, %c0_i32_0 : i32, i32
  }
  func.func @transform_3(%arg0: i32) -> (i32, i32) {
    %c0_i32 = arith.constant 0 : i32
    %c0_i32_0 = arith.constant 0 : i32
    %c0_i32_1 = arith.constant 0 : i32
    return %c0_i32, %c0_i32_0 : i32, i32
  }
  func.func @transform_4(%arg0: i32) -> (i32, i32) {
    %c0_i32 = arith.constant 0 : i32
    %c0_i32_0 = arith.constant 0 : i32
    %c0_i32_1 = arith.constant 0 : i32
    return %c0_i32, %c0_i32_0 : i32, i32
  }
  func.func @transform_5(%arg0: i32) -> (i32, i32) {
    %c0_i32 = arith.constant 0 : i32
    %c0_i32_0 = arith.constant 0 : i32
    %c0_i32_1 = arith.constant 0 : i32
    return %c0_i32, %c0_i32_0 : i32, i32
  }
  func.func @transform_6(%arg0: i32) -> (i32, i32) {
    %c0_i32 = arith.constant 0 : i32
    %c0_i32_0 = arith.constant 0 : i32
    %c0_i32_1 = arith.constant 0 : i32
    return %c0_i32, %c0_i32_0 : i32, i32
  }
  func.func @transform_7(%arg0: i32) -> (i32, i32) {
    %c0_i32 = arith.constant 0 : i32
    %c0_i32_0 = arith.constant 0 : i32
    %c0_i32_1 = arith.constant 0 : i32
    return %c0_i32, %c0_i32_0 : i32, i32
  }
  func.func @transform_8(%arg0: i32) -> (i32, i32) {
    %c0_i32 = arith.constant 0 : i32
    %c0_i32_0 = arith.constant 0 : i32
    %c0_i32_1 = arith.constant 0 : i32
    return %c0_i32, %c0_i32_0 : i32, i32
  }
  func.func @transform_9(%arg0: i32) -> (i32, i32) {
    %c0_i32 = arith.constant 0 : i32
    %c0_i32_0 = arith.constant 0 : i32
    %c0_i32_1 = arith.constant 0 : i32
    return %c0_i32, %c0_i32_0 : i32, i32
  }
  func.func @transform_10(%arg0: i32) -> (i32, i32, i32) {
    %c0_i32 = arith.constant 0 : i32
    %c0_i32_0 = arith.constant 0 : i32
    %c0_i32_1 = arith.constant 0 : i32
    return %arg0, %c0_i32, %c0_i32_0 : i32, i32, i32
  }
}

</mosaic_0001>

<bundles_post_ra>
// kernel: tpu_custom_call.1
= control target key start
LH: loop header
LB: loop body
LE: loop exit
PB: predicated region body
PF: predicated region fallthrough
CT: control target
= control target key end

     0   :  { %15 = vsyncpa [#allocation4], 0  ;;  %s830_s0 = inlined_call_operand.vmem [shape: f32[1,16,128], index: 0, kind: input, shape index: {}]   ;;  %s831_s1 = inlined_call_operand.hbm [shape: bf16[4,16], index: 1, kind: input, shape index: {}]   ;;  %s832_s2 = inlined_call_operand.vmem [shape: f32[4,1], index: 2, kind: input, shape index: {}]   ;;  %s833_s3 = inlined_call_operand.hbm [shape: bf16[4,36], index: 3, kind: input, shape index: {}]   ;;  %s834_s4 = inlined_call_operand.vmem [shape: f32[4,1], index: 4, kind: input, shape index: {}]   ;;  %s835_s5 = inlined_call_operand.vmem [shape: bf16[16,4], index: 5, kind: input, shape index: {}]   ;;  %s836_s6 = inlined_call_operand.vmem [shape: f32[16,1], index: 6, kind: input, shape index: {}]   ;;  %s837_s7 = inlined_call_operand.vmem [shape: f32[9,128], index: 7, kind: input, shape index: {}]   ;;  %s838_s8 = inlined_call_operand.vmem [shape: f32[15,16], index: 8, kind: input, shape index: {}]   ;;  %s839_s9 = inlined_call_operand.vmem [shape: f32[15,128], index: 9, kind: input, shape index: {}]   ;;  %s840_s10 = inlined_call_operand.hbm [shape: f32[1,16,128], index: 10, kind: output, shape index: {}]  }
   0x1   :  { %16 = vsyncpa [#allocation7], 0 }
   0x2   :  { %17 = vsyncpa [#allocation5], 0  ;;  %s637_s13 = smov [#allocation3]   ;;  %s638_s15 = smov [#allocation6]  }
   0x3   :  { %s26_s14 = sshll.u32 %s637_s13, 4  ;;  %s38_s16 = sshll.u32 %s638_s15, 4  ;;  %s27_s14 = int_to_ptr.vmem [resolvable:$true] %s26_s14  ;;  %s39_s16 = int_to_ptr.vmem [resolvable:$true] %s38_s16 }
   0x4   :  { %s565_s19 = scalar_lea.hbm %s831_s1, 32 }
   0x5   :  { %p566_p0 = scmp.ne.s32.totalorder %s831_s1, %s565_s19  ;;  %p569_p1 = scmp.lt.u32.totalorder %s565_s19, %s831_s1 }
   0x7   :  { %p571_p2 = pnand %p569_p1, %p566_p0 }
   0x9   :  { %574 = shalt.err (!%p571_p2)
}
   0xa   :  { %s575_s24 = scalar_lea.vmem %s27_s14, 32  ;;  %p580_p4 = scmp.lt.s32.totalorder %s27_s14, %s27_s14 }
   0xb   :  { %p576_p3 = scmp.ne.s32.totalorder %s27_s14, %s575_s24  ;;  %p581_p5 = scmp.lt.s32.totalorder %s575_s24, %s575_s24 }
   0xd   :  { %p582_p6 = por %p581_p5, %p580_p4 }
   0xf   :  { %p583_p7 = pnand %p582_p6, %p576_p3 }
  0x11   :  { %586 = shalt.err (!%p583_p7)
}
  0x12   :  { %29 = dma.hbm_to_vmem [thread:$0]  %s831_s1, 32, %s27_s14, [#allocation4]  }
  0x13   :  { %s587_s29 = scalar_lea.hbm %s833_s3, 32 }
  0x14   :  { %p588_p8 = scmp.ne.s32.totalorder %s833_s3, %s587_s29  ;;  %p591_p9 = scmp.lt.u32.totalorder %s587_s29, %s833_s3 }
  0x16   :  { %p593_p10 = pnand %p591_p9, %p588_p8 }
  0x18   :  { %596 = shalt.err (!%p593_p10)
}
  0x19   :  { %s597_s15 = scalar_lea.vmem %s39_s16, 32  ;;  %p602_p12 = scmp.lt.s32.totalorder %s39_s16, %s39_s16 }
  0x1a   :  { %p598_p11 = scmp.ne.s32.totalorder %s39_s16, %s597_s15  ;;  %p603_p13 = scmp.lt.s32.totalorder %s597_s15, %s597_s15 }
  0x1c   :  { %p604_p0 = por %p603_p13, %p602_p12 }
  0x1e   :  { %p605_p1 = pnand %p604_p0, %p598_p11 }
  0x20   :  { %608 = shalt.err (!%p605_p1)
}
  0x21   :  { %41 = dma.hbm_to_vmem [thread:$0]  %s833_s3, 32, %s39_s16, [#allocation7]  }
  0x22   :  { %631 = dma.done.wait [#allocation4], 32  }
  0x23   :  { %632 = vsyncadd [#allocation4], 4294967264 }
  0x24   :  { %633 = dma.done.wait [#allocation7], 32  }
  0x25   :  { %634 = vsyncadd [#allocation7], 4294967264  ;;  %v639_v0 = vmov 0.0   ;;  %vm640_vm0 = vmmov 0   ;;  %v641_v1 = vmov 0   ;;  %v740_v2 = vld [vmem:[%s830_s0] sm:$0xff] }
  0x26   :  { %508 = vmatprep.subr.bf16.mxu0 %v639_v0  ;;  %510 = vmatprep.mubr.msk.bf16.mxu0 %vm640_vm0, %v639_v0  ;;  %v745_v3 = vld [vmem:[%s830_s0 + $0x8] sm:$0xff]  ;;  %v65_v5 = vld [vmem:[%s832_s2] sm:$0xf]  ;;  %vm71_vm1 = vcmask 130048   ;;  %v486_v12 = vld [vmem:[%s837_s7 + $0x4] ss:$0 sm:$0xff] }
  0x27   :  { %556 = vset.pattern.permute.xlu0 %v641_v1  ;;  %514 = vmatprep.subr.bf16.mxu1 %v639_v0  ;;  %v64_v4 = vpack.c.bf16 %v745_v3, %v740_v2  ;;  %v63_v6 = vld [vmem:[#allocation3] sm:$0x3]  ;;  %s642_s2 = smov 7   ;;  %s643_s22 = smov 8   ;;  %v262_v16 = vld [vmem:[%s836_s6] sm:$0xff]  ;;  %vm214_vm2 = vcmask 1041408  }
  0x28   :  { %520 = vmatprep.mubr.msk.bf16.mxu1 %vm640_vm0, %v639_v0  ;;  %557 = vset.pattern.permute.xlu1 %v641_v1  ;;  %s644_s23 = smov 6   ;;  %s645_s24 = smov 1   ;;  %v204_v17 = vld [vmem:[%s834_s4] sm:$0xf]  ;;  %v263_v18 = vld [vmem:[%s836_s6 + $0x8] sm:$0xff]  ;;  %vm210_vm3 = vcmask 293888  }
  0x29   :  { %68 = vperm.xlu0 %556, %v65_v5   ;;  %509 = vmatpush3.bf16.msra.mxu0 %v64_v4  ;;  %s646_s25 = smov 127   ;;  %s647_s26 = smov 122   ;;  %v483_v19 = vld [vmem:[%s837_s7 + $0x1] ss:$0 sm:$0xff]  ;;  %v482_v20 = vld [vmem:[%s837_s7] ss:$0 sm:$0xff] }
  0x2a   :  { %524 = vmatprep.subr.bf16.mxu0 %v639_v0  ;;  %s648_s27 = smov 121   ;;  %s649_s28 = smov 120   ;;  %v484_v25 = vld [vmem:[%s837_s7 + $0x2] ss:$0 sm:$0xff]  ;;  %v485_v26 = vld [vmem:[%s837_s7 + $0x3] ss:$0 sm:$0xff] }
  0x2b   :  { %v487_v31 = vld [vmem:[%s837_s7 + $0x5] ss:$0 sm:$0xff]  ;;  %v488_v32 = vld [vmem:[%s837_s7 + $0x6] ss:$0 sm:$0xff]  ;;  %v489_v37 = vld [vmem:[%s837_s7 + $0x7] ss:$0 sm:$0xff] }
  0x2c   :  { %511 = vmatmul.mubr.msk.bf16.vlgmr.msra.gmra.mrb[0].mxu0 %vm71_vm1, %v63_v6  ;;  %v490_v38 = vld [vmem:[%s837_s7 + $0x8] ss:$0 sm:$0xff]  ;;  %v195_v52 = vld [vmem:[#allocation6] sm:$0x3]  ;;  %v558_v62 = vld [vmem:[%s835_s5] sm:$0xff]   ;;  %vm279_vm4 = vcmask 31744  }
  0x2d   :  { %526 = vmatprep.mubr.msk.bf16.mxu0 %vm640_vm0, %v639_v0  ;;  %v327_v63 = vld [vmem:[%s838_s8] sm:$0xff]  ;;  %vm410_vm5 = vcmask 1046528  }
  0xa8   :  { %v69_v7 = vpop.permute.xlu0 %68 }
  0xff   :  { %v109_v8 = vpop.f32.mrb[0].mxu0 }
 0x100   :  { %v110_v9 = vadd.f32 %v109_v8, %v69_v7  ;;  %v512_v10 = vpop.f32.mrb[1].mxu0 }
 0x101   :  { %v112_v11 = vpop.f32.mrb[2].mxu0 }
 0x102   :  { %v115_v13 = vmax.f32 %v110_v9, 0.0  ;;  %v513_v14 = vpop.f32.mrb[3].mxu0  ;;  %v328_v11 = vld [vmem:[%s838_s8 + $0x8] sm:$0x7f] }
 0x104   :  { %125 = vrot.lane.b32.xlu1 %v115_v13, %s642_s2  ;;  %116 = vrot.lane.b32.xlu0 %v115_v13, %s643_s22  ;;  %v157_v15 = vmul.f32 %v486_v12, %v115_v13 }
 0x106   :  { %158 = vst [vmem:[#allocation2 + $0x10] sm:$0xf] %v157_v15 }
 0x108   :  { %134 = vrot.lane.b32.xlu1 %v115_v13, %s644_s23  ;;  %143 = vrot.lane.b32.xlu0 %v115_v13, %s645_s24 }
 0x10c   :  { %159 = vrot.lane.b32.xlu1 %v115_v13, %s646_s25  ;;  %168 = vrot.lane.b32.xlu0 %v115_v13, %s647_s26 }
 0x110   :  { %177 = vrot.lane.b32.xlu1 %v115_v13, %s648_s27  ;;  %186 = vrot.lane.b32.xlu0 %v115_v13, %s649_s28 }
 0x114   :  { %266 = vperm.xlu0 %556, %v262_v16   ;;  %207 = vperm.xlu1 %557, %v204_v17  }
 0x118   :  { %271 = vperm.xlu1 %557, %v263_v18  }
 0x176   :  { %v126_v21 = vpop.permute.xlu1 %125  ;;  %v117_v22 = vpop.permute.xlu0 %116 }
 0x177   :  { %v132_v23 = vmul.f32 %v483_v19, %v126_v21  ;;  %v123_v24 = vmul.f32 %v482_v20, %v117_v22 }
 0x179   :  { %133 = vst [vmem:[#allocation2 + $0x4] sm:$0xf] %v132_v23  ;;  %124 = vst [vmem:[#allocation2] sm:$0xf] %v123_v24 }
 0x17a   :  { %v135_v27 = vpop.permute.xlu1 %134  ;;  %v144_v28 = vpop.permute.xlu0 %143 }
 0x17b   :  { %v141_v29 = vmul.f32 %v484_v25, %v135_v27  ;;  %v150_v30 = vmul.f32 %v485_v26, %v144_v28 }
 0x17d   :  { %142 = vst [vmem:[#allocation2 + $0x8] sm:$0xf] %v141_v29  ;;  %151 = vst [vmem:[#allocation2 + $0xc] sm:$0xf] %v150_v30 }
 0x17e   :  { %v160_v33 = vpop.permute.xlu1 %159  ;;  %v169_v34 = vpop.permute.xlu0 %168 }
 0x17f   :  { %v166_v35 = vmul.f32 %v487_v31, %v160_v33  ;;  %v175_v36 = vmul.f32 %v488_v32, %v169_v34 }
 0x180   :  { %v196_v43 = vld [vmem:[#allocation2] sm:$0xff] }
 0x181   :  { %167 = vst [vmem:[#allocation2 + $0x14] sm:$0xf] %v166_v35  ;;  %176 = vst [vmem:[#allocation2 + $0x18] sm:$0xf] %v175_v36 }
 0x182   :  { %v178_v39 = vpop.permute.xlu1 %177  ;;  %v187_v40 = vpop.permute.xlu0 %186 }
 0x183   :  { %v184_v41 = vmul.f32 %v489_v37, %v178_v39  ;;  %v193_v42 = vmul.f32 %v490_v38, %v187_v40  ;;  %v438_v38 = vld [vmem:[%s839_s9] sm:$0xff]  ;;  %v439_v39 = vld [vmem:[%s839_s9 + $0x8] sm:$0x7f]  ;;  %s650_s9 = smov [#allocation8]  }
 0x184   :  { %v197_v44 = vld [vmem:[#allocation2 + $0x8] sm:$0xff]  ;;  %s468_s13 = sshll.u32 %s650_s9, 4  ;;  %s469_s13 = int_to_ptr.vmem [resolvable:$true] %s468_s13 }
 0x185   :  { %185 = vst [vmem:[#allocation2 + $0x1c] sm:$0xf] %v184_v41  ;;  %194 = vst [vmem:[#allocation2 + $0x20] sm:$0xf] %v193_v42  ;;  %v201_v45 = vpack.c.bf16 %v197_v44, %v196_v43  ;;  %s609_s15 = scalar_lea.vmem %s469_s13, 256  ;;  %p614_p3 = scmp.lt.s32.totalorder %s469_s13, %s469_s13 }
 0x186   :  { %p610_p2 = scmp.ne.s32.totalorder %s469_s13, %s609_s15  ;;  %p615_p4 = scmp.lt.s32.totalorder %s609_s15, %s609_s15 }
 0x187   :  { %515 = vmatpush3.bf16.msra.mxu1 %v201_v45 }
 0x188   :  { %516 = vmatprep.subr.bf16.mxu1 %v639_v0  ;;  %v198_v46 = vld [vmem:[#allocation2 + $0x10] sm:$0xff]  ;;  %p616_p5 = por %p615_p4, %p614_p3 }
 0x18a   :  { %p617_p6 = pnand %p616_p5, %p610_p2 }
 0x18c   :  { %v199_v47 = vld [vmem:[#allocation2 + $0x18] sm:$0xff]  ;;  %v200_v48 = vld [vmem:[#allocation2 + $0x20] sm:$0xf] }
 0x18d   :  { %v202_v49 = vpack.c.bf16 %v199_v47, %v198_v46  ;;  %v203_v50 = vpack.c.bf16 %v200_v48, %v200_v48 }
 0x18f   :  { %517 = vmatpush3.bf16.msra.mxu1 %v202_v49  ;;  %v216_v51 = vsel %vm214_vm2, %v203_v50, 0 }
 0x190   :  { %518 = vmatprep.subr.bf16.mxu1 %v639_v0 }
 0x193   :  { %519 = vmatpush3.bf16.msra.mxu1 %v216_v51  ;;  %v208_v53 = vpop.permute.xlu1 %207  ;;  %v267_v1 = vpop.permute.xlu0 %266 }
 0x196   :  { %521 = vmatmul.mubr.msk.bf16.vlgmr.msra.gmra.mrb[0].mxu1 %vm210_vm3, %v195_v52 }
 0x197   :  { %v272_v5 = vpop.permute.xlu1 %271 }
 0x269   :  { %v252_v54 = vpop.f32.mrb[0].mxu1 }
 0x26a   :  { %v253_v55 = vadd.f32 %v252_v54, %v208_v53  ;;  %v522_v56 = vpop.f32.mrb[1].mxu1 }
 0x26b   :  { %v255_v57 = vpop.f32.mrb[2].mxu1 }
 0x26c   :  { %v258_v58 = vmax.f32 %v253_v55, 0.0  ;;  %v523_v59 = vpop.f32.mrb[3].mxu1 }
 0x26e   :  { %v261_v60 = vpack.c.bf16 %v258_v58, %v258_v58 }
 0x270   :  { %v284_v61 = vsel %vm214_vm2, %v261_v60, 0 }
 0x271   :  { %525 = vmatpush3.bf16.msra.mxu0 %v284_v61 }
 0x274   :  { %527 = vmatmul.mubr.msk.bf16.vlgmr.msra.gmra.mrb[4].mxu0 %vm279_vm4, %v558_v62 }
 0x275   :  { %534 = vmatprep.mubr.msk.f32.mxu0 %vm71_vm1, %v327_v63 }
 0x347   :  { %v320_v0 = vpop.f32.mrb[4].mxu0 }
 0x348   :  { %v528_v4 = vpop.f32.mrb[5].mxu0  ;;  %v321_v7 = vadd.f32 %v320_v0, %v267_v1 }
 0x349   :  { %v323_v6 = vpop.f32.mrb[6].mxu0 }
 0x34a   :  { %v324_v8 = vadd.f32 %v323_v6, %v272_v5  ;;  %v529_v9 = vpop.f32.mrb[7].mxu0 }
 0x34c   :  { %v537_v10 = vpack.c.bf16 %v324_v8, %v321_v7 }
 0x34e   :  { %538 = vmatprep.subr.bf16.mxu0 %v537_v10 }
 0x34f   :  { %540 = vmatpush3.bf16.msra.mxu0 %v537_v10 }
 0x352   :  { %535 = vmatmul.mubr.msk.f32.vlgmr.msra.gmra.mrb[8].mxu0 %vm71_vm1, %v328_v11 }
 0x425   :  { %v536_v12 = vpop.f32.mrb[8].mxu0 }
 0x426   :  { %v401_v13 = vpop.f32.mrb[9].mxu0  ;;  %v411_v14 = vsel %vm410_vm5, %v536_v12, 0.0 }
 0x427   :  { %v412_v15 = vadd.f32 %v411_v14, %v401_v13 }
 0x429   :  { %v413_v16 = vrot.slane %v412_v15, 4 }
 0x42b   :  { %v414_v17 = vadd.f32 %v413_v16, %v412_v15 }
 0x42d   :  { %v415_v18 = vrot.slane %v414_v17, 2 }
 0x42f   :  { %v416_v19 = vadd.f32 %v415_v18, %v414_v17 }
 0x431   :  { %v417_v20 = vrot.slane %v416_v19, 1 }
 0x433   :  { %v418_v21 = vadd.f32 %v417_v20, %v416_v19 }
 0x435   :  { %v420_v22 = vmul.f32 0.06666667, %v418_v21 }
 0x437   :  { %v421_v23 = vsub.f32 %v401_v13, %v420_v22  ;;  %v422_v24 = vsub.f32 %v536_v12, %v420_v22 }
 0x439   :  { %v423_v25 = vmul.f32 %v421_v23, %v421_v23  ;;  %v424_v26 = vmul.f32 %v422_v24, %v422_v24 }
 0x43b   :  { %v425_v27 = vsel %vm410_vm5, %v424_v26, 0.0 }
 0x43c   :  { %v426_v28 = vadd.f32 %v425_v27, %v423_v25 }
 0x43e   :  { %v427_v29 = vrot.slane %v426_v28, 4 }
 0x440   :  { %v428_v30 = vadd.f32 %v427_v29, %v426_v28 }
 0x442   :  { %v429_v31 = vrot.slane %v428_v30, 2 }
 0x444   :  { %v430_v32 = vadd.f32 %v429_v31, %v428_v30 }
 0x446   :  { %v431_v33 = vrot.slane %v430_v32, 1 }
 0x448   :  { %v432_v34 = vadd.f32 %v431_v33, %v430_v32 }
 0x44a   :  { %v433_v35 = vmul.f32 0.06666667, %v432_v34 }
 0x44c   :  { %v434_v36 = vadd.f32 1e-06, %v433_v35 }
 0x44e   :  { %559 = vrsqrt.f32 %v434_v36 }
 0x458   :  { %v560_v37 = vpop.eup %559 }
 0x459   :  { %v436_v40 = vmul.f32 %v560_v37, %v421_v23  ;;  %v437_v41 = vmul.f32 %v560_v37, %v422_v24 }
 0x45b   :  { %v440_v42 = vmul.f32 %v438_v38, %v436_v40  ;;  %v441_v43 = vmul.f32 %v439_v39, %v437_v41 }
 0x45d   :  { %v442_v44 = vsel %vm410_vm5, %v441_v43, 0.0 }
 0x45e   :  { %v443_v45 = vadd.f32 %v442_v44, %v440_v42 }
 0x460   :  { %v444_v46 = vrot.slane %v443_v45, 4 }
 0x462   :  { %v445_v47 = vadd.f32 %v444_v46, %v443_v45 }
 0x464   :  { %v446_v48 = vrot.slane %v445_v47, 2 }
 0x466   :  { %v447_v49 = vadd.f32 %v446_v48, %v445_v47 }
 0x468   :  { %v448_v50 = vrot.slane %v447_v49, 1 }
 0x46a   :  { %v449_v51 = vadd.f32 %v448_v50, %v447_v49 }
 0x46c   :  { %v450_v52 = vsub.f32 0.0, %v449_v51 }
 0x46e   :  { %v451_v53 = vmul.f32 1.442695, %v450_v52 }
 0x470   :  { %561 = vpow2.f32 %v451_v53 }
 0x47a   :  { %v562_v54 = vpop.eup %561 }
 0x47b   :  { %v453_v55 = vadd.f32 1.0, %v562_v54 }
 0x47d   :  { %563 = vrcp.f32 %v453_v55 }
 0x487   :  { %v564_v56 = vpop.eup %563 }
 0x488   :  { %v455_v57 = vmul.f32 %v564_v56, %v321_v7  ;;  %v456_v58 = vmul.f32 %v564_v56, %v324_v8 }
 0x48a   :  { %v457_v59 = vadd.f32 %v455_v57, %v740_v2  ;;  %v458_v60 = vadd.f32 %v456_v58, %v745_v3 }
 0x48c   :  { %v459_v61 = vmax.f32 %v457_v59, 0.0  ;;  %v460_v62 = vmax.f32 %v458_v60, 0.0 }
 0x48e   :  { %461 = vst [vmem:[#allocation8] sm:$0xff] %v459_v61  ;;  %462 = vst [vmem:[#allocation8 + $0x8] sm:$0xff] %v460_v62 }
 0x48f   :  { %620 = shalt.err (!%p617_p6)
}
 0x490   :  { %s621_s3 = scalar_lea.hbm %s840_s10, 256 }
 0x491   :  { %p622_p7 = scmp.ne.s32.totalorder %s840_s10, %s621_s3  ;;  %p625_p8 = scmp.lt.u32.totalorder %s621_s3, %s840_s10 }
 0x493   :  { %p627_p9 = pnand %p625_p8, %p622_p7 }
 0x495   :  { %630 = shalt.err (!%p627_p9)
}
 0x496   :  { %s651_s19 = smov 128  }
 0x497   :  { %474 = dma.vmem_to_hbm [thread:$0]  %s469_s13, 256, %s840_s10, [#allocation5], %s651_s19, %s651_s19, %s643_s22  }
 0x498   :  { %635 = dma.done.wait [#allocation5], 256  }
 0x499   :  { %636 = vsyncadd [#allocation5], 4294967040 }
 0x49a   :  { %478 = vsyncpa [#allocation4], 1 }
 0x49b   :  { %479 = vsyncpa [#allocation7], 1 }
 0x49c   :  { %480 = vsyncpa [#allocation5], 1 }

</bundles_post_ra>
